<compile_context>
chip_gen: v6e
topology: v6e:2x2x1
jax: 0.10.0
libtpu: 0.0.40
codegen_flags: <defaults>
</compile_context>

<pallas_src>
import math
import jax
import jax.numpy as jnp
from jax.experimental import pallas as pl
from jax.experimental.pallas import tpu as pltpu


# ----------------------------- Pallas kernel ------------------------------ #
def residual_block_kernel(x_ref, wcat_ref, bcat_ref, w2_ref, b2_ref, o_ref):
    out_dim = o_ref.shape[-1]

    x = x_ref[...]                                                # (TB, in_dim) bf16

    # Fused x-side GEMM: x @ [w1 | wr] -> (TB, 2*out_dim), f32 accumulation.
    hr = jnp.dot(x, wcat_ref[...], preferred_element_type=jnp.float32)
    hr = hr + bcat_ref[...]                                       # broadcast (1, 2*out_dim)

    h = jnp.maximum(hr[:, :out_dim], 0.0)                         # ReLU branch (f32)
    r = hr[:, out_dim:]                                           # residual branch (f32)

    # Second GEMM: bf16 LHS/RHS on the MXU, f32 accumulate.
    y = jnp.dot(h.astype(jnp.bfloat16), w2_ref[...],
                preferred_element_type=jnp.float32)
    y = y + b2_ref[...] + r

    o_ref[...] = y.astype(o_ref.dtype)


def residual_block(x, wcat, bcat, w2, b2, *, tb=512):
    """Residual MLP block forward.

    x:    (B, in_dim)        bf16
    wcat: (in_dim, 2*out_d)  bf16   pre-packed [w1 | wr] (pack once, not per call)
    bcat: (1, 2*out_d)       f32    pre-packed [b1 | br]
    w2:   (out_d, out_d)     bf16
    b2:   (1, out_d)         f32
    """
    B, in_dim = x.shape
    out_dim = w2.shape[1]
    assert wcat.shape == (in_dim, 2 * out_dim), wcat.shape
    assert bcat.shape == (1, 2 * out_dim), bcat.shape
    # Lane-dense output / aligned hr split (keep when generalizing: pad dims to
    # a multiple of 128 rather than emitting narrow masked stores).
    assert in_dim % 128 == 0 and out_dim % 128 == 0, (in_dim, out_dim)

    # Tile selection: whole batch in one grid step when it fits, else 512-row
    # tiles (measured ~85% of HBM roofline vs ~29% at 128-row tiles).
    tb = min(tb, B)
    Bp = pl.cdiv(B, tb) * tb
    xp = x if Bp == B else jnp.pad(x, ((0, Bp - B), (0, 0)))      # ragged-batch tail

    grid = (Bp // tb,)
    # Constant index_map -> weights/biases stay resident in VMEM across steps.
    resident = lambda shape: pl.BlockSpec(shape, lambda i: (0, 0))

    out = pl.pallas_call(
        residual_block_kernel,
        out_shape=jax.ShapeDtypeStruct((Bp, out_dim), x.dtype),
        grid=grid,
        in_specs=[
            pl.BlockSpec((tb, in_dim), lambda i: (i, 0)),         # x: tiled over batch
            resident((in_dim, 2 * out_dim)),                      # [w1 | wr]
            resident((1, 2 * out_dim)),                           # [b1 | br]
            resident((out_dim, out_dim)),                         # w2
            resident((1, out_dim)),                               # b2
        ],
        out_specs=pl.BlockSpec((tb, out_dim), lambda i: (i, 0)),  # lane-dense output
        compiler_params=pltpu.CompilerParams(
            dimension_semantics=("parallel",),                    # megacore sharding
            vmem_limit_bytes=64 * 1024 * 1024,                    # within v7x physical
        ),
    )(xp, wcat, bcat, w2, b2)

    return out if Bp == B else out[:B]


# ------------------------- deterministic init ----------------------------- #
def orthogonal_init(key, fan_out, fan_in, gain):
    """Mimics torch.nn.init.orthogonal_ on a (fan_out, fan_in) weight."""
    rows, cols = fan_out, fan_in
    flat = jax.random.normal(key, (max(rows, cols), min(rows, cols)),
                             dtype=jnp.float32)
    q, r = jnp.linalg.qr(flat)
    d = jnp.sign(jnp.diag(r))
    q = q * d[None, :]
    if rows < cols:
        q = q.T
    return gain * q[:rows, :cols]                                  # (fan_out, fan_in)


def make_params(key, in_dim, out_dim):
    """Builds bf16 weights / f32 biases and packs [w1|wr], [b1|br] ONCE here
    (hoisted out of the forward path per the perf review)."""
    gain = math.sqrt(2.0)  # calculate_gain('relu')
    k1, k2, k3 = jax.random.split(key, 3)
    # PyTorch Linear weight is (out, in); transpose to (in, out) for x @ W.
    w1 = orthogonal_init(k1, out_dim, in_dim, gain).T.astype(jnp.bfloat16)
    w2 = orthogonal_init(k2, out_dim, out_dim, gain).T.astype(jnp.bfloat16)
    wr = orthogonal_init(k3, out_dim, in_dim, gain).T.astype(jnp.bfloat16)
    b1 = jnp.zeros((1, out_dim), jnp.float32)
    b2 = jnp.zeros((1, out_dim), jnp.float32)
    br = jnp.zeros((1, out_dim), jnp.float32)

    wcat = jnp.concatenate([w1, wr], axis=1)                       # (in_dim, 2*out_dim)
    bcat = jnp.concatenate([b1, br], axis=1)                       # (1, 2*out_dim)

    packed = (wcat, bcat, w2, b2)
    unpacked = (w1, b1, w2, b2, wr, br)
    return packed, unpacked


def reference(x, w1, b1, w2, b2, wr, br):
    """Pure-JAX f32 reference on the same (bf16) parameter values."""
    xf = x.astype(jnp.float32)
    h = jnp.maximum(xf @ w1.astype(jnp.float32) + b1, 0.0)
    y = h @ w2.astype(jnp.float32) + b2
    r = xf @ wr.astype(jnp.float32) + br
    return y + r


# --------------------------------- main ------------------------------------ #
if __name__ == "__main__":
    key = jax.random.PRNGKey(0)
    kx, kp = jax.random.split(key)

    # Lane-aligned shapes: feature dims multiples of 128; small demo batch.
    batch, in_dim, out_dim = 256, 256, 128
    x = jax.random.normal(kx, (batch, in_dim), dtype=jnp.float32).astype(jnp.bfloat16)
    packed, unpacked = make_params(kp, in_dim, out_dim)

    out = residual_block(x, *packed)          # tb=512 default -> one grid step here
    out = jax.block_until_ready(out)
    assert out.shape == (batch, out_dim)

    ref = reference(x, *unpacked)
    out_f32 = out.astype(jnp.float32)
    max_ref = float(jnp.max(jnp.abs(ref))) + 1e-6
    # Elementwise check: scaled atol (bf16 rounding of h, MXU reduction order)
    # plus a small rtol, instead of a single global-max ratio.
    ok = bool(jnp.all(jnp.abs(out_f32 - ref) <= 2e-2 * max_ref + 2e-2 * jnp.abs(ref)))
    assert ok, "elementwise tolerance check failed"

    print("KERNEL_OK")
</pallas_src>

<mosaic_0001>
module attributes {stable_mosaic.version = 11 : i64} {
  func.func @residual_block_kernel(%arg0: i32, %arg1: memref<256x256xbf16, #tpu.memory_space<vmem>>, %arg2: memref<256x256xbf16, #tpu.memory_space<vmem>>, %arg3: memref<1x256xf32, #tpu.memory_space<vmem>>, %arg4: memref<128x128xbf16, #tpu.memory_space<vmem>>, %arg5: memref<1x128xf32, #tpu.memory_space<vmem>>, %arg6: memref<256x128xbf16, #tpu.memory_space<vmem>>) attributes {dimension_semantics = [#tpu.dimension_semantics<parallel>], iteration_bounds = array<i64: 1>, scalar_prefetch = 0 : i64, scratch_operands = 0 : i64, tpu.core_type = #tpu.core_type<tc>, window_params = [{transform_indices = @transform_0, window_bounds = array<i64: 256, 256>}, {pipeline_mode = #tpu.pipeline_mode<synchronous>, transform_indices = @transform_1, window_bounds = array<i64: 256, 256>}, {pipeline_mode = #tpu.pipeline_mode<synchronous>, transform_indices = @transform_2, window_bounds = array<i64: 1, 256>}, {pipeline_mode = #tpu.pipeline_mode<synchronous>, transform_indices = @transform_3, window_bounds = array<i64: 128, 128>}, {pipeline_mode = #tpu.pipeline_mode<synchronous>, transform_indices = @transform_4, window_bounds = array<i64: 1, 128>}, {transform_indices = @transform_5, window_bounds = array<i64: 256, 128>}]} {
    %c0 = arith.constant 0 : index
    %c0_0 = arith.constant 0 : index
    %0 = vector.load %arg1[%c0, %c0_0] : memref<256x256xbf16, #tpu.memory_space<vmem>>, vector<256x256xbf16>
    %c0_1 = arith.constant 0 : index
    %c0_2 = arith.constant 0 : index
    %1 = vector.load %arg2[%c0_1, %c0_2] : memref<256x256xbf16, #tpu.memory_space<vmem>>, vector<256x256xbf16>
    %cst = arith.constant dense<0.000000e+00> : vector<256x256xf32>
    %2 = tpu.matmul %0, %1, %cst {dimension_numbers = #tpu.dot_dimension_numbers<[1], [0], [0], [1], [0, 0, 1, 1], [], []>} : vector<256x256xbf16>, vector<256x256xbf16>, vector<256x256xf32> -> vector<256x256xf32>
    %c0_3 = arith.constant 0 : index
    %c0_4 = arith.constant 0 : index
    %3 = vector.load %arg3[%c0_3, %c0_4] : memref<1x256xf32, #tpu.memory_space<vmem>>, vector<1x256xf32>
    %4 = vector.broadcast %3 : vector<1x256xf32> to vector<256x256xf32>
    %5 = arith.addf %2, %4 : vector<256x256xf32>
    %6 = vector.extract_strided_slice %5 {offsets = [0, 0], sizes = [256, 128], strides = [1, 1]} : vector<256x256xf32> to vector<256x128xf32>
    %cst_5 = arith.constant 0.000000e+00 : f32
    %7 = vector.broadcast %cst_5 : f32 to vector<256x128xf32>
    %8 = arith.maximumf %6, %7 : vector<256x128xf32>
    %9 = vector.extract_strided_slice %5 {offsets = [0, 128], sizes = [256, 128], strides = [1, 1]} : vector<256x256xf32> to vector<256x128xf32>
    %10 = arith.truncf %8 : vector<256x128xf32> to vector<256x128xbf16>
    %c0_6 = arith.constant 0 : index
    %c0_7 = arith.constant 0 : index
    %11 = vector.load %arg4[%c0_6, %c0_7] : memref<128x128xbf16, #tpu.memory_space<vmem>>, vector<128x128xbf16>
    %cst_8 = arith.constant dense<0.000000e+00> : vector<256x128xf32>
    %12 = tpu.matmul %10, %11, %cst_8 {dimension_numbers = #tpu.dot_dimension_numbers<[1], [0], [0], [1], [0, 0, 1, 1], [], []>} : vector<256x128xbf16>, vector<128x128xbf16>, vector<256x128xf32> -> vector<256x128xf32>
    %c0_9 = arith.constant 0 : index
    %c0_10 = arith.constant 0 : index
    %13 = vector.load %arg5[%c0_9, %c0_10] : memref<1x128xf32, #tpu.memory_space<vmem>>, vector<1x128xf32>
    %14 = vector.broadcast %13 : vector<1x128xf32> to vector<256x128xf32>
    %15 = arith.addf %12, %14 : vector<256x128xf32>
    %16 = arith.addf %15, %9 : vector<256x128xf32>
    %17 = arith.truncf %16 : vector<256x128xf32> to vector<256x128xbf16>
    %c0_11 = arith.constant 0 : index
    %c0_12 = arith.constant 0 : index
    %18 = vector.load %arg6[%c0_11, %c0_12] : memref<256x128xbf16, #tpu.memory_space<vmem>>, vector<256x128xbf16>
    tpu.vector_store %arg6[%c0_11, %c0_12], %17 {strides = array<i32>} : memref<256x128xbf16, #tpu.memory_space<vmem>>, vector<256x128xbf16>,
    return
  }
  func.func @transform_0(%arg0: i32) -> (i32, i32) {
    %c0_i32 = arith.constant 0 : i32
    %c0_i32_0 = arith.constant 0 : i32
    return %arg0, %c0_i32 : i32, i32
  }
  func.func @transform_1(%arg0: i32) -> (i32, i32) {
    %c0_i32 = arith.constant 0 : i32
    %c0_i32_0 = arith.constant 0 : i32
    %c0_i32_1 = arith.constant 0 : i32
    return %c0_i32, %c0_i32_0 : i32, i32
  }
  func.func @transform_2(%arg0: i32) -> (i32, i32) {
    %c0_i32 = arith.constant 0 : i32
    %c0_i32_0 = arith.constant 0 : i32
    %c0_i32_1 = arith.constant 0 : i32
    return %c0_i32, %c0_i32_0 : i32, i32
  }
  func.func @transform_3(%arg0: i32) -> (i32, i32) {
    %c0_i32 = arith.constant 0 : i32
    %c0_i32_0 = arith.constant 0 : i32
    %c0_i32_1 = arith.constant 0 : i32
    return %c0_i32, %c0_i32_0 : i32, i32
  }
  func.func @transform_4(%arg0: i32) -> (i32, i32) {
    %c0_i32 = arith.constant 0 : i32
    %c0_i32_0 = arith.constant 0 : i32
    %c0_i32_1 = arith.constant 0 : i32
    return %c0_i32, %c0_i32_0 : i32, i32
  }
  func.func @transform_5(%arg0: i32) -> (i32, i32) {
    %c0_i32 = arith.constant 0 : i32
    %c0_i32_0 = arith.constant 0 : i32
    return %arg0, %c0_i32 : i32, i32
  }
}

</mosaic_0001>

<bundles_post_ra>
// kernel: tpu_custom_call.1
= control target key start
LH: loop header
LB: loop body
LE: loop exit
PB: predicated region body
PF: predicated region fallthrough
CT: control target
= control target key end

     0   :  { %10 = vsyncpa [#allocation3], 0  ;;  %s1941_s0 = inlined_call_operand.hbm [shape: bf16[256,256], index: 0, kind: input, shape index: {}]   ;;  %s1942_s1 = inlined_call_operand.hbm [shape: bf16[256,256], index: 1, kind: input, shape index: {}]   ;;  %s1943_s2 = inlined_call_operand.vmem [shape: f32[1,256], index: 2, kind: input, shape index: {}]   ;;  %s1944_s3 = inlined_call_operand.hbm [shape: bf16[128,128], index: 3, kind: input, shape index: {}]   ;;  %s1945_s4 = inlined_call_operand.vmem [shape: f32[1,128], index: 4, kind: input, shape index: {}]   ;;  %s1946_s5 = inlined_call_operand.hbm [shape: bf16[256,128], index: 5, kind: output, shape index: {}]  }
   0x1   :  { %11 = vsyncpa [#allocation6], 0 }
   0x2   :  { %12 = vsyncpa [#allocation4], 0  ;;  %s1676_s18 = smov [#allocation5]   ;;  %s1677_s20 = smov [#allocation2]  }
   0x3   :  { %s30_s19 = sshll.u32 %s1676_s18, 4  ;;  %s18_s21 = sshll.u32 %s1677_s20, 4  ;;  %s31_s19 = int_to_ptr.vmem [resolvable:$true] %s30_s19  ;;  %s19_s21 = int_to_ptr.vmem [resolvable:$true] %s18_s21 }
   0x4   :  { %s1598_s22 = scalar_lea.vmem %s31_s19, 4096  ;;  %p1603_p1 = scmp.lt.s32.totalorder %s31_s19, %s31_s19 }
   0x5   :  { %p1599_p0 = scmp.ne.s32.totalorder %s31_s19, %s1598_s22  ;;  %p1604_p2 = scmp.lt.s32.totalorder %s1598_s22, %s1598_s22 }
   0x7   :  { %p1605_p3 = por %p1604_p2, %p1603_p1 }
   0x9   :  { %p1606_p4 = pnand %p1605_p3, %p1599_p0 }
   0xb   :  { %1609 = shalt.err (!%p1606_p4)
}
   0xc   :  { %s1678_s23 = smov 128   ;;  %s1679_s24 = smov 8  }
   0xd   :  { %36 = dma.hbm_to_vmem [thread:$0]  %s1942_s1, 4096, %s31_s19, [#allocation6], %s1678_s23, %s1678_s23, %s1679_s24  }
   0xe   :  { %s1618_s27 = scalar_lea.vmem %s19_s21, 4096  ;;  %p1623_p6 = scmp.lt.s32.totalorder %s19_s21, %s19_s21 }
   0xf   :  { %p1619_p5 = scmp.ne.s32.totalorder %s19_s21, %s1618_s27  ;;  %p1624_p7 = scmp.lt.s32.totalorder %s1618_s27, %s1618_s27 }
  0x11   :  { %p1625_p8 = por %p1624_p7, %p1623_p6 }
  0x13   :  { %p1626_p9 = pnand %p1625_p8, %p1619_p5 }
  0x15   :  { %1629 = shalt.err (!%p1626_p9)
}
  0x16   :  { %24 = dma.hbm_to_vmem [thread:$0]  %s1941_s0, 4096, %s19_s21, [#allocation3], %s1678_s23, %s1678_s23, %s1679_s24  }
  0x17   :  { %s1680_s30 = smov [#allocation7]  }
  0x18   :  { %s44_s6 = sshll.u32 %s1680_s30, 4  ;;  %s45_s6 = int_to_ptr.vmem [resolvable:$true] %s44_s6 }
  0x19   :  { %s1638_s7 = scalar_lea.vmem %s45_s6, 1024  ;;  %p1643_p11 = scmp.lt.s32.totalorder %s45_s6, %s45_s6 }
  0x1a   :  { %p1639_p10 = scmp.ne.s32.totalorder %s45_s6, %s1638_s7  ;;  %p1644_p12 = scmp.lt.s32.totalorder %s1638_s7, %s1638_s7 }
  0x1c   :  { %p1645_p13 = por %p1644_p12, %p1643_p11 }
  0x1e   :  { %p1646_p0 = pnand %p1645_p13, %p1639_p10 }
  0x20   :  { %1649 = shalt.err (!%p1646_p0)
}
  0x21   :  { %s1681_s1 = smov 64   ;;  %s1682_s8 = smov 4  }
  0x22   :  { %50 = dma.hbm_to_vmem [thread:$0]  %s1944_s3, 1024, %s45_s6, [#allocation6], %s1681_s1, %s1681_s1, %s1682_s8  }
  0x23   :  { %1670 = dma.done.wait [#allocation3], 4096  }
  0x24   :  { %1671 = vsyncadd [#allocation3], 4294963200 }
  0x25   :  { %1672 = dma.done.wait [#allocation6], 5120  }
  0x26   :  { %1673 = vsyncadd [#allocation6], 4294962176  ;;  %v1486_v0 = vld [vmem:[#allocation5 + $0x74] ss:$8 sps:$4 sm:$0xff]   ;;  %v1488_v1 = vld [vmem:[#allocation5 + $0x70] ss:$8 sps:$4 sm:$0xff]  }
  0x27   :  { %459 = vmatprep.subr.bf16.mxu0 %v1486_v0  ;;  %v1489_v2 = vld [vmem:[#allocation5 + $0x64] ss:$8 sps:$4 sm:$0xff]   ;;  %1446 = vmatprep.subr.bf16.mxu1 %v1486_v0  ;;  %v1491_v3 = vld [vmem:[#allocation5 + $0x60] ss:$8 sps:$4 sm:$0xff]   ;;  %v1492_v4 = vld [vmem:[#allocation5 + $0x54] ss:$8 sps:$4 sm:$0xff]  }
  0x28   :  { %460 = vmatpush1.bf16.msra.mxu0 %v1488_v1  ;;  %1462 = vmatpush1.bf16.msra.mxu1 %v1488_v1  ;;  %v1494_v5 = vld [vmem:[#allocation5 + $0x50] ss:$8 sps:$4 sm:$0xff]   ;;  %v1495_v6 = vld [vmem:[#allocation5 + $0x44] ss:$8 sps:$4 sm:$0xff]   ;;  %v1497_v7 = vld [vmem:[#allocation5 + $0x40] ss:$8 sps:$4 sm:$0xff]  }
  0x29   :  { %461 = vmatprep.subr.bf16.mxu0 %v1489_v2  ;;  %1447 = vmatprep.subr.bf16.mxu1 %v1489_v2  ;;  %v1498_v8 = vld [vmem:[#allocation5 + $0x34] ss:$8 sps:$4 sm:$0xff]   ;;  %v1500_v9 = vld [vmem:[#allocation5 + $0x30] ss:$8 sps:$4 sm:$0xff]   ;;  %v1501_v10 = vld [vmem:[#allocation5 + $0x24] ss:$8 sps:$4 sm:$0xff]  }
  0x2a   :  { %v1503_v11 = vld [vmem:[#allocation5 + $0x20] ss:$8 sps:$4 sm:$0xff]   ;;  %v1504_v12 = vld [vmem:[#allocation5 + $0x14] ss:$8 sps:$4 sm:$0xff]   ;;  %v1536_v13 = vld [vmem:[#allocation2 + $0x4] ss:$8 sps:$4 sm:$0xff]  }
  0x2b   :  { %v1506_v14 = vld [vmem:[#allocation5 + $0x10] ss:$8 sps:$4 sm:$0xff]   ;;  %v1507_v15 = vld [vmem:[#allocation5 + $0x4] ss:$8 sps:$4 sm:$0xff]   ;;  %491 = vmatprep.mubr.bf16.mxu0 %v1536_v13  ;;  %v1509_v16 = vld [vmem:[#allocation5] ss:$8 sps:$4 sm:$0xff]  }
  0x2c   :  { %462 = vmatpush1.bf16.msra.mxu0 %v1491_v3  ;;  %1463 = vmatpush1.bf16.msra.mxu1 %v1491_v3  ;;  %v1510_v17 = vld [vmem:[#allocation5 + $0xf4] ss:$8 sps:$4 sm:$0xff]   ;;  %v1512_v18 = vld [vmem:[#allocation5 + $0xf0] ss:$8 sps:$4 sm:$0xff]   ;;  %v1513_v19 = vld [vmem:[#allocation5 + $0xe4] ss:$8 sps:$4 sm:$0xff]  }
  0x2d   :  { %463 = vmatprep.subr.bf16.mxu0 %v1492_v4  ;;  %1448 = vmatprep.subr.bf16.mxu1 %v1492_v4  ;;  %v1515_v20 = vld [vmem:[#allocation5 + $0xe0] ss:$8 sps:$4 sm:$0xff]   ;;  %v1566_v21 = vld [vmem:[#allocation2 + $0xc4] ss:$8 sps:$4 sm:$0xff]   ;;  %v1516_v22 = vld [vmem:[#allocation5 + $0xd4] ss:$8 sps:$4 sm:$0xff]  }
  0x2e   :  { %611 = vmatprep.mubr.bf16.mxu1 %v1566_v21  ;;  %v1518_v23 = vld [vmem:[#allocation5 + $0xd0] ss:$8 sps:$4 sm:$0xff]   ;;  %v1519_v24 = vld [vmem:[#allocation5 + $0xc4] ss:$8 sps:$4 sm:$0xff]   ;;  %v1521_v25 = vld [vmem:[#allocation5 + $0xc0] ss:$8 sps:$4 sm:$0xff]  }
  0x2f   :  { %v1522_v26 = vld [vmem:[#allocation5 + $0xb4] ss:$8 sps:$4 sm:$0xff]   ;;  %v1524_v27 = vld [vmem:[#allocation5 + $0xb0] ss:$8 sps:$4 sm:$0xff]   ;;  %v1525_v28 = vld [vmem:[#allocation5 + $0xa4] ss:$8 sps:$4 sm:$0xff]  }
  0x30   :  { %464 = vmatpush1.bf16.msra.mxu0 %v1494_v5  ;;  %1464 = vmatpush1.bf16.msra.mxu1 %v1494_v5  ;;  %v1527_v29 = vld [vmem:[#allocation5 + $0xa0] ss:$8 sps:$4 sm:$0xff]   ;;  %v1528_v30 = vld [vmem:[#allocation5 + $0x94] ss:$8 sps:$4 sm:$0xff]   ;;  %v1530_v31 = vld [vmem:[#allocation5 + $0x90] ss:$8 sps:$4 sm:$0xff]  }
  0x31   :  { %465 = vmatprep.subr.bf16.mxu0 %v1495_v6  ;;  %1449 = vmatprep.subr.bf16.mxu1 %v1495_v6  ;;  %v1531_v32 = vld [vmem:[#allocation5 + $0x84] ss:$8 sps:$4 sm:$0xff]   ;;  %v1533_v33 = vld [vmem:[#allocation5 + $0x80] ss:$8 sps:$4 sm:$0xff]   ;;  %v1582_v34 = vld [vmem:[#allocation7 + $0x38] sm:$0xff]  }
  0x32   :  { %v1534_v35 = vld [vmem:[#allocation2] ss:$8 sps:$4 sm:$0xff]   ;;  %v1537_v37 = vld [vmem:[#allocation2 + $0x14] ss:$8 sps:$4 sm:$0xff]   ;;  %v1539_v41 = vld [vmem:[#allocation2 + $0x10] ss:$8 sps:$4 sm:$0xff]  }
  0x33   :  { %v1564_v36 = vld [vmem:[#allocation2 + $0xc0] ss:$8 sps:$4 sm:$0xff]   ;;  %v1570_v38 = vld [vmem:[#allocation2 + $0xd4] ss:$8 sps:$4 sm:$0xff]   ;;  %v1572_v42 = vld [vmem:[#allocation2 + $0xd0] ss:$8 sps:$4 sm:$0xff]  }
  0x34   :  { %466 = vmatpush1.bf16.msra.mxu0 %v1497_v7  ;;  %1465 = vmatpush1.bf16.msra.mxu1 %v1497_v7  ;;  %v1583_v39 = vld [vmem:[#allocation7 + $0x30] sm:$0xff]   ;;  %v1584_v40 = vld [vmem:[#allocation7 + $0x28] sm:$0xff]   ;;  %v1585_v45 = vld [vmem:[#allocation7 + $0x20] sm:$0xff]  }
  0x35   :  { %467 = vmatprep.subr.bf16.mxu0 %v1498_v8  ;;  %1450 = vmatprep.subr.bf16.mxu1 %v1498_v8  ;;  %v1540_v43 = vld [vmem:[#allocation2 + $0x24] ss:$8 sps:$4 sm:$0xff]   ;;  %v1542_v46 = vld [vmem:[#allocation2 + $0x20] ss:$8 sps:$4 sm:$0xff]   ;;  %v1543_v48 = vld [vmem:[#allocation2 + $0x34] ss:$8 sps:$4 sm:$0xff]   ;;  %v129_v8 = vlaneseq }
  0x36   :  { %v1576_v44 = vld [vmem:[#allocation2 + $0xe4] ss:$8 sps:$4 sm:$0xff]   ;;  %v1578_v47 = vld [vmem:[#allocation2 + $0xe0] ss:$8 sps:$4 sm:$0xff]   ;;  %v1579_v49 = vld [vmem:[#allocation2 + $0xf4] ss:$8 sps:$4 sm:$0xff]  }
  0x37   :  { %v1545_v50 = vld [vmem:[#allocation2 + $0x30] ss:$8 sps:$4 sm:$0xff]   ;;  %v1546_v52 = vld [vmem:[#allocation2 + $0x44] ss:$8 sps:$4 sm:$0xff]   ;;  %v1548_v53 = vld [vmem:[#allocation2 + $0x40] ss:$8 sps:$4 sm:$0xff]  }
  0x38   :  { %468 = vmatpush1.bf16.msra.mxu0 %v1500_v9  ;;  %1466 = vmatpush1.bf16.msra.mxu1 %v1500_v9  ;;  %v1581_v51 = vld [vmem:[#allocation2 + $0xf0] ss:$8 sps:$4 sm:$0xff]   ;;  %v1549_v54 = vld [vmem:[#allocation2 + $0x54] ss:$8 sps:$4 sm:$0xff]   ;;  %v1552_v56 = vld [vmem:[#allocation2 + $0x64] ss:$8 sps:$4 sm:$0xff]  }
  0x39   :  { %469 = vmatprep.subr.bf16.mxu0 %v1501_v10  ;;  %1451 = vmatprep.subr.bf16.mxu1 %v1501_v10  ;;  %v1551_v55 = vld [vmem:[#allocation2 + $0x50] ss:$8 sps:$4 sm:$0xff]   ;;  %v1554_v57 = vld [vmem:[#allocation2 + $0x60] ss:$8 sps:$4 sm:$0xff]   ;;  %v1555_v58 = vld [vmem:[#allocation2 + $0x74] ss:$8 sps:$4 sm:$0xff]  }
  0x3a   :  { %v1557_v59 = vld [vmem:[#allocation2 + $0x70] ss:$8 sps:$4 sm:$0xff]   ;;  %v1558_v60 = vld [vmem:[#allocation2 + $0x84] ss:$8 sps:$4 sm:$0xff]   ;;  %v1560_v61 = vld [vmem:[#allocation2 + $0x80] ss:$8 sps:$4 sm:$0xff]  }
  0x3b   :  { %v1561_v62 = vld [vmem:[#allocation2 + $0x94] ss:$8 sps:$4 sm:$0xff]   ;;  %v1563_v0 = vld [vmem:[#allocation2 + $0x90] ss:$8 sps:$4 sm:$0xff]   ;;  %v1567_v1 = vld [vmem:[#allocation2 + $0xa4] ss:$8 sps:$4 sm:$0xff]  }
  0x3c   :  { %470 = vmatpush1.bf16.msra.mxu0 %v1503_v11  ;;  %1467 = vmatpush1.bf16.msra.mxu1 %v1503_v11  ;;  %v1586_v63 = vld [vmem:[#allocation7 + $0x18] sm:$0xff]   ;;  %v1587_v2 = vld [vmem:[#allocation7 + $0x10] sm:$0xff]   ;;  %v1588_v3 = vld [vmem:[#allocation7 + $0x8] sm:$0xff]   ;;  %v1726_v9 = vshrl.u32 %v129_v8, 7 }
  0x3d   :  { %471 = vmatprep.subr.bf16.mxu0 %v1504_v12  ;;  %1452 = vmatprep.subr.bf16.mxu1 %v1504_v12  ;;  %v1569_v4 = vld [vmem:[#allocation2 + $0xa0] ss:$8 sps:$4 sm:$0xff]   ;;  %v1573_v5 = vld [vmem:[#allocation2 + $0xb4] ss:$8 sps:$4 sm:$0xff]   ;;  %v1575_v7 = vld [vmem:[#allocation2 + $0xb0] ss:$8 sps:$4 sm:$0xff]  }
  0x3e   :  { %v1589_v6 = vld [vmem:[#allocation7] sm:$0xff]   ;;  %v131_v10 = vsub.s32 0, %v1726_v9 }
  0x3f   :  { %v1732_v11 = vld [vmem:[%s1943_s2] sm:$0x3] }
  0x40   :  { %472 = vmatpush1.bf16.msra.mxu0 %v1506_v14  ;;  %1468 = vmatpush1.bf16.msra.mxu1 %v1506_v14  ;;  %v1735_v12 = vrot.slane %v1732_v11, %v131_v10 }
  0x41   :  { %473 = vmatprep.subr.bf16.mxu0 %v1507_v15  ;;  %1453 = vmatprep.subr.bf16.mxu1 %v1507_v15 }
  0x44   :  { %474 = vmatpush1.bf16.msra.mxu0 %v1509_v16  ;;  %1469 = vmatpush1.bf16.msra.mxu1 %v1509_v16 }
  0x45   :  { %475 = vmatprep.subr.bf16.mxu0 %v1510_v17  ;;  %1454 = vmatprep.subr.bf16.mxu1 %v1510_v17 }
  0x48   :  { %476 = vmatpush2.bf16.msra.mxu0 %v1512_v18  ;;  %1470 = vmatpush2.bf16.msra.mxu1 %v1512_v18 }
  0x49   :  { %477 = vmatprep.subr.bf16.mxu0 %v1513_v19  ;;  %1455 = vmatprep.subr.bf16.mxu1 %v1513_v19 }
  0x4c   :  { %478 = vmatpush2.bf16.msra.mxu0 %v1515_v20  ;;  %1471 = vmatpush2.bf16.msra.mxu1 %v1515_v20 }
  0x4d   :  { %479 = vmatprep.subr.bf16.mxu0 %v1516_v22  ;;  %1456 = vmatprep.subr.bf16.mxu1 %v1516_v22 }
  0x50   :  { %480 = vmatpush2.bf16.msra.mxu0 %v1518_v23  ;;  %1472 = vmatpush2.bf16.msra.mxu1 %v1518_v23 }
  0x51   :  { %481 = vmatprep.subr.bf16.mxu0 %v1519_v24  ;;  %1457 = vmatprep.subr.bf16.mxu1 %v1519_v24 }
  0x54   :  { %482 = vmatpush2.bf16.msra.mxu0 %v1521_v25  ;;  %1473 = vmatpush2.bf16.msra.mxu1 %v1521_v25 }
  0x55   :  { %483 = vmatprep.subr.bf16.mxu0 %v1522_v26  ;;  %1458 = vmatprep.subr.bf16.mxu1 %v1522_v26 }
  0x58   :  { %484 = vmatpush2.bf16.msra.mxu0 %v1524_v27  ;;  %1474 = vmatpush2.bf16.msra.mxu1 %v1524_v27 }
  0x59   :  { %485 = vmatprep.subr.bf16.mxu0 %v1525_v28  ;;  %1459 = vmatprep.subr.bf16.mxu1 %v1525_v28 }
  0x5c   :  { %486 = vmatpush2.bf16.msra.mxu0 %v1527_v29  ;;  %1475 = vmatpush2.bf16.msra.mxu1 %v1527_v29 }
  0x5d   :  { %487 = vmatprep.subr.bf16.mxu0 %v1528_v30  ;;  %1460 = vmatprep.subr.bf16.mxu1 %v1528_v30 }
  0x60   :  { %488 = vmatpush2.bf16.msra.mxu0 %v1530_v31  ;;  %1476 = vmatpush2.bf16.msra.mxu1 %v1530_v31 }
  0x61   :  { %489 = vmatprep.subr.bf16.mxu0 %v1531_v32  ;;  %1461 = vmatprep.subr.bf16.mxu1 %v1531_v32 }
  0x64   :  { %490 = vmatpush2.bf16.msra.mxu0 %v1533_v33  ;;  %1477 = vmatpush2.bf16.msra.mxu1 %v1533_v33 }
  0x65   :  { %1398 = vmatprep.subr.bf16.mxu1 %v1582_v34 }
  0x67   :  { %492 = vmatmul.mubr.bf16.vlgmr.msra.gmra.mxu0 %v1534_v35  ;;  %612 = vmatmul.mubr.bf16.vlgmr.msra.gmra.mxu1 %v1564_v36 }
  0x68   :  { %501 = vmatprep.mubr.bf16.mxu0 %v1537_v37  ;;  %621 = vmatprep.mubr.bf16.mxu1 %v1570_v38 }
  0x69   :  { %1399 = vmatpush3.bf16.msra.mxu1 %v1582_v34 }
  0x6a   :  { %1400 = vmatprep.subr.bf16.mxu1 %v1583_v39 }
  0x6d   :  { %1401 = vmatpush3.bf16.msra.mxu1 %v1583_v39 }
  0x6e   :  { %1402 = vmatprep.subr.bf16.mxu1 %v1584_v40 }
  0x6f   :  { %502 = vmatmul.mubr.bf16.gmra.mxu0 %v1539_v41  ;;  %622 = vmatmul.mubr.bf16.gmra.mxu1 %v1572_v42 }
  0x70   :  { %511 = vmatprep.mubr.bf16.mxu0 %v1540_v43  ;;  %631 = vmatprep.mubr.bf16.mxu1 %v1576_v44 }
  0x71   :  { %1403 = vmatpush3.bf16.msra.mxu1 %v1584_v40 }
  0x72   :  { %1404 = vmatprep.subr.bf16.mxu1 %v1585_v45 }
  0x75   :  { %1405 = vmatpush3.bf16.msra.mxu1 %v1585_v45 }
  0x76   :  { %1406 = vmatprep.subr.bf16.mxu1 %v1586_v63 }
  0x77   :  { %512 = vmatmul.mubr.bf16.gmra.mxu0 %v1542_v46  ;;  %632 = vmatmul.mubr.bf16.gmra.mxu1 %v1578_v47 }
  0x78   :  { %521 = vmatprep.mubr.bf16.mxu0 %v1543_v48  ;;  %641 = vmatprep.mubr.bf16.mxu1 %v1579_v49 }
  0x79   :  { %1407 = vmatpush3.bf16.msra.mxu1 %v1586_v63 }
  0x7a   :  { %1408 = vmatprep.subr.bf16.mxu1 %v1587_v2 }
  0x7d   :  { %1409 = vmatpush3.bf16.msra.mxu1 %v1587_v2 }
  0x7e   :  { %1410 = vmatprep.subr.bf16.mxu1 %v1588_v3 }
  0x7f   :  { %522 = vmatmul.mubr.bf16.gmra.mxu0 %v1545_v50  ;;  %642 = vmatmul.mubr.bf16.gmra.mxu1 %v1581_v51 }
  0x80   :  { %531 = vmatprep.mubr.bf16.mxu0 %v1546_v52 }
  0x81   :  { %1411 = vmatpush3.bf16.msra.mxu1 %v1588_v3 }
  0x82   :  { %1412 = vmatprep.subr.bf16.mxu1 %v1589_v6 }
  0x85   :  { %1413 = vmatpush3.bf16.msra.mxu1 %v1589_v6 }
  0x87   :  { %532 = vmatmul.mubr.bf16.gmra.mxu0 %v1548_v53 }
  0x88   :  { %541 = vmatprep.mubr.bf16.mxu0 %v1549_v54 }
  0x8f   :  { %542 = vmatmul.mubr.bf16.gmra.mxu0 %v1551_v55 }
  0x90   :  { %551 = vmatprep.mubr.bf16.mxu0 %v1552_v56 }
  0x97   :  { %552 = vmatmul.mubr.bf16.gmra.mxu0 %v1554_v57 }
  0x98   :  { %561 = vmatprep.mubr.bf16.mxu0 %v1555_v58 }
  0x9f   :  { %562 = vmatmul.mubr.bf16.gmra.mxu0 %v1557_v59 }
  0xa0   :  { %571 = vmatprep.mubr.bf16.mxu0 %v1558_v60 }
  0xa7   :  { %572 = vmatmul.mubr.bf16.gmra.mxu0 %v1560_v61 }
  0xa8   :  { %581 = vmatprep.mubr.bf16.mxu0 %v1561_v62 }
  0xaf   :  { %582 = vmatmul.mubr.bf16.gmra.mxu0 %v1563_v0 }
  0xb0   :  { %591 = vmatprep.mubr.bf16.mxu0 %v1567_v1 }
  0xb7   :  { %592 = vmatmul.mubr.bf16.gmra.mxu0 %v1569_v4 }
  0xb8   :  { %601 = vmatprep.mubr.bf16.mxu0 %v1573_v5 }
  0xbf   :  { %602 = vmatmul.mubr.bf16.gmra.mxu0 %v1575_v7 }
 0x127   :  { %v493_v13 = vpop.f32.mrf.mxu0  ;;  %v613_v3 = vpop.f32.mrf.mxu1 }
 0x128   :  { %v494_v15 = vadd.f32 %v493_v13, %v1735_v12 }
 0x129   :  { %v1737_v14 = vpop.f32.mrf.mxu0  ;;  %v1776_v8 = vpop.f32.mrf.mxu1 }
 0x12a   :  { %v652_v19 = vmax.f32 %v494_v15, 0.0 }
 0x12b   :  { %v497_v16 = vpop.f32.mrf.mxu0 }
 0x12c   :  { %v498_v17 = vadd.f32 %v497_v16, %v1735_v12 }
 0x12d   :  { %v1741_v18 = vpop.f32.mrf.mxu0 }
 0x12e   :  { %v653_v20 = vmax.f32 %v498_v17, 0.0 }
 0x12f   :  { %v503_v21 = vpop.f32.mrf.mxu0 }
 0x130   :  { %v684_v22 = vpack.c.bf16 %v653_v20, %v652_v19  ;;  %v504_v24 = vadd.f32 %v503_v21, %v1735_v12  ;;  %v617_v19 = vpop.f32.mrf.mxu1 }
 0x131   :  { %v1743_v23 = vpop.f32.mrf.mxu0 }
 0x132   :  { %1414 = vmatprep.mubr.bf16.mxu1 %v684_v22  ;;  %v654_v28 = vmax.f32 %v504_v24, 0.0 }
 0x133   :  { %v507_v25 = vpop.f32.mrf.mxu0 }
 0x134   :  { %v508_v26 = vadd.f32 %v507_v25, %v1735_v12  ;;  %v1784_v25 = vpop.f32.mrf.mxu1 }
 0x135   :  { %v1747_v27 = vpop.f32.mrf.mxu0 }
 0x136   :  { %v655_v29 = vmax.f32 %v508_v26, 0.0 }
 0x137   :  { %v513_v30 = vpop.f32.mrf.mxu0 }
 0x138   :  { %v685_v31 = vpack.c.bf16 %v655_v29, %v654_v28  ;;  %v514_v33 = vadd.f32 %v513_v30, %v1735_v12 }
 0x139   :  { %v1749_v32 = vpop.f32.mrf.mxu0 }
 0x13a   :  { %1415 = vmatmul.mubr.bf16.vlgmr.msra.gmra.mxu1 %v685_v31  ;;  %v656_v37 = vmax.f32 %v514_v33, 0.0  ;;  %v623_v33 = vpop.f32.mrf.mxu1 }
 0x13b   :  { %v517_v34 = vpop.f32.mrf.mxu0 }
 0x13c   :  { %v518_v35 = vadd.f32 %v517_v34, %v1735_v12 }
 0x13d   :  { %v1753_v36 = vpop.f32.mrf.mxu0 }
 0x13e   :  { %v657_v38 = vmax.f32 %v518_v35, 0.0 }
 0x13f   :  { %v523_v39 = vpop.f32.mrf.mxu0 }
 0x140   :  { %v686_v40 = vpack.c.bf16 %v657_v38, %v656_v37  ;;  %v524_v42 = vadd.f32 %v523_v39, %v1735_v12  ;;  %v1792_v39 = vpop.f32.mrf.mxu1 }
 0x141   :  { %v1755_v41 = vpop.f32.mrf.mxu0 }
 0x142   :  { %1418 = vmatprep.mubr.bf16.mxu1 %v686_v40  ;;  %v658_v46 = vmax.f32 %v524_v42, 0.0 }
 0x143   :  { %v527_v43 = vpop.f32.mrf.mxu0 }
 0x144   :  { %v528_v44 = vadd.f32 %v527_v43, %v1735_v12 }
 0x145   :  { %v1759_v45 = vpop.f32.mrf.mxu0 }
 0x146   :  { %v659_v47 = vmax.f32 %v528_v44, 0.0 }
 0x147   :  { %v533_v48 = vpop.f32.mrf.mxu0 }
 0x148   :  { %v687_v49 = vpack.c.bf16 %v659_v47, %v658_v46  ;;  %v534_v51 = vadd.f32 %v533_v48, %v1735_v12  ;;  %v627_v47 = vpop.f32.mrf.mxu1 }
 0x149   :  { %v1761_v50 = vpop.f32.mrf.mxu0 }
 0x14a   :  { %1419 = vmatmul.mubr.bf16.gmra.mxu1 %v687_v49  ;;  %v660_v55 = vmax.f32 %v534_v51, 0.0 }
 0x14b   :  { %v537_v52 = vpop.f32.mrf.mxu0 }
 0x14c   :  { %v538_v53 = vadd.f32 %v537_v52, %v1735_v12 }
 0x14d   :  { %v1765_v54 = vpop.f32.mrf.mxu0 }
 0x14e   :  { %v661_v56 = vmax.f32 %v538_v53, 0.0  ;;  %v1800_v53 = vpop.f32.mrf.mxu1 }
 0x14f   :  { %v543_v57 = vpop.f32.mrf.mxu0 }
 0x150   :  { %v688_v58 = vpack.c.bf16 %v661_v56, %v660_v55  ;;  %v544_v60 = vadd.f32 %v543_v57, %v1735_v12 }
 0x151   :  { %v1767_v59 = vpop.f32.mrf.mxu0 }
 0x152   :  { %1422 = vmatprep.mubr.bf16.mxu1 %v688_v58  ;;  %v662_v0 = vmax.f32 %v544_v60, 0.0 }
 0x153   :  { %v547_v61 = vpop.f32.mrf.mxu0 }
 0x154   :  { %v548_v62 = vadd.f32 %v547_v61, %v1735_v12  ;;  %v633_v61 = vpop.f32.mrf.mxu1 }
 0x155   :  { %v1771_v63 = vpop.f32.mrf.mxu0 }
 0x156   :  { %v663_v1 = vmax.f32 %v548_v62, 0.0 }
 0x157   :  { %v553_v2 = vpop.f32.mrf.mxu0 }
 0x158   :  { %v689_v4 = vpack.c.bf16 %v663_v1, %v662_v0  ;;  %v554_v6 = vadd.f32 %v553_v2, %v1735_v12 }
 0x159   :  { %v1773_v5 = vpop.f32.mrf.mxu0 }
 0x15a   :  { %1423 = vmatmul.mubr.bf16.gmra.mxu1 %v689_v4  ;;  %v664_v15 = vmax.f32 %v554_v6, 0.0  ;;  %v1808_v4 = vpop.f32.mrf.mxu1 }
 0x15b   :  { %v557_v7 = vpop.f32.mrf.mxu0 }
 0x15c   :  { %v558_v10 = vadd.f32 %v557_v7, %v1735_v12 }
 0x15d   :  { %v1779_v13 = vpop.f32.mrf.mxu0 }
 0x15e   :  { %v665_v16 = vmax.f32 %v558_v10, 0.0 }
 0x15f   :  { %v563_v17 = vpop.f32.mrf.mxu0 }
 0x160   :  { %v690_v20 = vpack.c.bf16 %v665_v16, %v664_v15  ;;  %v564_v22 = vadd.f32 %v563_v17, %v1735_v12  ;;  %v637_v17 = vpop.f32.mrf.mxu1 }
 0x161   :  { %v1781_v21 = vpop.f32.mrf.mxu0 }
 0x162   :  { %1426 = vmatprep.mubr.bf16.mxu1 %v690_v20  ;;  %v666_v29 = vmax.f32 %v564_v22, 0.0  ;;  %v614_v22 = vadd.f32 %v613_v3, %v1735_v12  ;;  %v628_v3 = vadd.f32 %v627_v47, %v1735_v12 }
 0x163   :  { %v567_v24 = vpop.f32.mrf.mxu0 }
 0x164   :  { %v568_v26 = vadd.f32 %v567_v24, %v1735_v12  ;;  %v618_v24 = vadd.f32 %v617_v19, %v1735_v12 }
 0x165   :  { %v1787_v28 = vpop.f32.mrf.mxu0 }
 0x166   :  { %v667_v30 = vmax.f32 %v568_v26, 0.0 }
 0x167   :  { %v573_v31 = vpop.f32.mrf.mxu0 }
 0x168   :  { %v691_v34 = vpack.c.bf16 %v667_v30, %v666_v29  ;;  %v574_v37 = vadd.f32 %v573_v31, %v1735_v12  ;;  %v1818_v31 = vpop.f32.mrf.mxu1 }
 0x169   :  { %v1789_v35 = vpop.f32.mrf.mxu0 }
 0x16a   :  { %1427 = vmatmul.mubr.bf16.gmra.mxu1 %v691_v34  ;;  %v668_v43 = vmax.f32 %v574_v37, 0.0  ;;  %v676_v37 = vmax.f32 %v614_v22, 0.0  ;;  %v1835_v22 = vld [vmem:[%s1945_s4] ss:$0 sm:$0xff]  ;;  %s1683_s4 = smov [#allocation8]  }
 0x16b   :  { %v577_v38 = vpop.f32.mrf.mxu0  ;;  %s1129_s12 = sshll.u32 %s1683_s4, 4  ;;  %s1130_s12 = int_to_ptr.vmem [resolvable:$true] %s1129_s12 }
 0x16c   :  { %v578_v40 = vadd.f32 %v577_v38, %v1735_v12  ;;  %v677_v38 = vmax.f32 %v618_v24, 0.0  ;;  %s1650_s13 = scalar_lea.vmem %s1130_s12, 2048  ;;  %p1655_p2 = scmp.lt.s32.totalorder %s1130_s12, %s1130_s12 }
 0x16d   :  { %v1795_v42 = vpop.f32.mrf.mxu0  ;;  %p1651_p1 = scmp.ne.s32.totalorder %s1130_s12, %s1650_s13  ;;  %p1656_p3 = scmp.lt.s32.totalorder %s1650_s13, %s1650_s13 }
 0x16e   :  { %v669_v44 = vmax.f32 %v578_v40, 0.0 }
 0x16f   :  { %v583_v46 = vpop.f32.mrf.mxu0  ;;  %p1657_p4 = por %p1656_p3, %p1655_p2 }
 0x170   :  { %v692_v48 = vpack.c.bf16 %v669_v44, %v668_v43  ;;  %v584_v51 = vadd.f32 %v583_v46, %v1735_v12  ;;  %v643_v44 = vpop.f32.mrf.mxu1  ;;  %v624_v46 = vadd.f32 %v623_v33, %v1735_v12 }
 0x171   :  { %v1797_v49 = vpop.f32.mrf.mxu0  ;;  %v644_v33 = vadd.f32 %v643_v44, %v1735_v12  ;;  %p1658_p5 = pnand %p1657_p4, %p1651_p1 }
 0x172   :  { %1430 = vmatprep.mubr.bf16.mxu1 %v692_v48  ;;  %v670_v57 = vmax.f32 %v584_v51, 0.0  ;;  %v696_v48 = vpack.c.bf16 %v677_v38, %v676_v37  ;;  %v634_v51 = vadd.f32 %v633_v61, %v1735_v12 }
 0x173   :  { %v587_v52 = vpop.f32.mrf.mxu0  ;;  %v682_v61 = vmax.f32 %v644_v33, 0.0 }
 0x174   :  { %v588_v55 = vadd.f32 %v587_v52, %v1735_v12  ;;  %v638_v52 = vadd.f32 %v637_v17, %v1735_v12 }
 0x175   :  { %v1803_v56 = vpop.f32.mrf.mxu0 }
 0x176   :  { %v671_v58 = vmax.f32 %v588_v55, 0.0  ;;  %v1825_v55 = vpop.f32.mrf.mxu1 }
 0x177   :  { %v593_v60 = vpop.f32.mrf.mxu0 }
 0x178   :  { %v693_v62 = vpack.c.bf16 %v671_v58, %v670_v57  ;;  %v594_v1 = vadd.f32 %v593_v60, %v1735_v12  ;;  %v678_v57 = vmax.f32 %v624_v46, 0.0  ;;  %v679_v58 = vmax.f32 %v628_v3, 0.0 }
 0x179   :  { %v1805_v0 = vpop.f32.mrf.mxu0  ;;  %v680_v60 = vmax.f32 %v634_v51, 0.0 }
 0x17a   :  { %1431 = vmatmul.mubr.bf16.gmra.mxu1 %v693_v62  ;;  %v672_v10 = vmax.f32 %v594_v1, 0.0  ;;  %v681_v62 = vmax.f32 %v638_v52, 0.0  ;;  %v647_v1 = vpop.f32.mrf.mxu1 }
 0x17b   :  { %v597_v2 = vpop.f32.mrf.mxu0  ;;  %v648_v47 = vadd.f32 %v647_v1, %v1735_v12 }
 0x17c   :  { %v598_v6 = vadd.f32 %v597_v2, %v1735_v12  ;;  %v697_v2 = vpack.c.bf16 %v679_v58, %v678_v57  ;;  %v1830_v17 = vpop.f32.mrf.mxu1 }
 0x17d   :  { %v1811_v7 = vpop.f32.mrf.mxu0 }
 0x17e   :  { %v673_v15 = vmax.f32 %v598_v6, 0.0  ;;  %v698_v6 = vpack.c.bf16 %v681_v62, %v680_v60 }
 0x17f   :  { %v603_v16 = vpop.f32.mrf.mxu0 }
 0x180   :  { %v694_v20 = vpack.c.bf16 %v673_v15, %v672_v10  ;;  %v604_v29 = vadd.f32 %v603_v16, %v1735_v12  ;;  %v683_v10 = vmax.f32 %v648_v47, 0.0  ;;  %v135_v16 = vsub.s32 1, %v1726_v9 }
 0x181   :  { %v1815_v26 = vpop.f32.mrf.mxu0 }
 0x182   :  { %1434 = vmatprep.mubr.bf16.mxu1 %v694_v20  ;;  %v674_v40 = vmax.f32 %v604_v29, 0.0  ;;  %v699_v15 = vpack.c.bf16 %v683_v10, %v682_v61  ;;  %v1838_v24 = vrot.slane %v1732_v11, %v135_v16 }
 0x183   :  { %v607_v30 = vpop.f32.mrf.mxu0 }
 0x184   :  { %v608_v34 = vadd.f32 %v607_v30, %v1735_v12  ;;  %v510_v9 = vadd.f32 %v1747_v27, %v1838_v24  ;;  %v500_v11 = vadd.f32 %v1741_v18, %v1838_v24  ;;  %v530_v18 = vadd.f32 %v1759_v45, %v1838_v24 }
 0x185   :  { %v516_v1 = vadd.f32 %v1749_v32, %v1838_v24  ;;  %v520_v33 = vadd.f32 %v1753_v36, %v1838_v24  ;;  %v546_v32 = vadd.f32 %v1767_v59, %v1838_v24  ;;  %v550_v36 = vadd.f32 %v1771_v63, %v1838_v24 }
 0x186   :  { %v675_v43 = vmax.f32 %v608_v34, 0.0  ;;  %v506_v34 = vadd.f32 %v1743_v23, %v1838_v24 }
 0x188   :  { %v695_v19 = vpack.c.bf16 %v675_v43, %v674_v40  ;;  %v496_v40 = vadd.f32 %v1737_v14, %v1838_v24  ;;  %v526_v14 = vadd.f32 %v1755_v41, %v1838_v24 }
 0x18a   :  { %1435 = vmatmul.mubr.bf16.gmra.mxu1 %v695_v19 }
 0x18b   :  { %1438 = vmatprep.mubr.bf16.mxu1 %v696_v48 }
 0x192   :  { %1439 = vmatmul.mubr.bf16.gmra.mxu1 %v697_v2 }
 0x193   :  { %1442 = vmatprep.mubr.bf16.mxu1 %v698_v6 }
 0x19a   :  { %1443 = vmatmul.mubr.bf16.gmra.mxu1 %v699_v15 }
 0x1fa   :  { %v1416_v20 = vpop.f32.mrf.mxu1 }
 0x1fb   :  { %v814_v29 = vadd.f32 %v1416_v20, %v1835_v22 }
 0x1fc   :  { %v805_v12 = vpop.f32.mrf.mxu1 }
 0x1fd   :  { %v806_v37 = vadd.f32 %v1835_v22, %v805_v12  ;;  %v934_v44 = vadd.f32 %v814_v29, %v506_v34 }
 0x1fe   :  { %v1417_v30 = vpop.f32.mrf.mxu1 }
 0x1ff   :  { %v817_v38 = vadd.f32 %v1417_v30, %v1835_v22  ;;  %v932_v19 = vadd.f32 %v806_v37, %v496_v40 }
 0x200   :  { %v808_v43 = vpop.f32.mrf.mxu1 }
 0x201   :  { %v935_v46 = vadd.f32 %v817_v38, %v510_v9  ;;  %v809_v3 = vadd.f32 %v1835_v22, %v808_v43  ;;  %v536_v9 = vadd.f32 %v1761_v50, %v1838_v24  ;;  %v540_v38 = vadd.f32 %v1765_v54, %v1838_v24 }
 0x202   :  { %v566_v50 = vadd.f32 %v1781_v21, %v1838_v24  ;;  %v570_v54 = vadd.f32 %v1787_v28, %v1838_v24 }
 0x203   :  { %v1287_v23 = vpack.c.bf16 %v935_v46, %v934_v44  ;;  %v933_v48 = vadd.f32 %v809_v3, %v500_v11 }
 0x205   :  { %1359 = vst [vmem:[#allocation8 + $0x8] sm:$0xff] %v1287_v23   ;;  %v1282_v27 = vpack.c.bf16 %v933_v48, %v932_v19 }
 0x207   :  { %1283 = vst [vmem:[#allocation8] sm:$0xff] %v1282_v27  }
 0x20a   :  { %v1420_v51 = vpop.f32.mrf.mxu1 }
 0x20b   :  { %v830_v57 = vadd.f32 %v1420_v51, %v1835_v22 }
 0x20c   :  { %v821_v52 = vpop.f32.mrf.mxu1 }
 0x20d   :  { %v822_v60 = vadd.f32 %v1835_v22, %v821_v52  ;;  %v938_v47 = vadd.f32 %v830_v57, %v526_v14  ;;  %v556_v52 = vadd.f32 %v1773_v5, %v1838_v24  ;;  %v586_v5 = vadd.f32 %v1797_v49, %v1838_v24 }
 0x20e   :  { %v1421_v58 = vpop.f32.mrf.mxu1 }
 0x20f   :  { %v833_v62 = vadd.f32 %v1421_v58, %v1835_v22  ;;  %v936_v10 = vadd.f32 %v822_v60, %v516_v1  ;;  %v560_v58 = vadd.f32 %v1779_v13, %v1838_v24  ;;  %v590_v13 = vadd.f32 %v1803_v56, %v1838_v24 }
 0x210   :  { %v824_v2 = vpop.f32.mrf.mxu1 }
 0x211   :  { %v939_v6 = vadd.f32 %v833_v62, %v530_v18  ;;  %v825_v61 = vadd.f32 %v1835_v22, %v824_v2 }
 0x213   :  { %v1297_v41 = vpack.c.bf16 %v939_v6, %v938_v47  ;;  %v937_v15 = vadd.f32 %v825_v61, %v520_v33 }
 0x215   :  { %1361 = vst [vmem:[#allocation8 + $0x18] sm:$0xff] %v1297_v41   ;;  %v1292_v45 = vpack.c.bf16 %v937_v15, %v936_v10  ;;  %v576_v41 = vadd.f32 %v1789_v35, %v1838_v24 }
 0x217   :  { %1360 = vst [vmem:[#allocation8 + $0x10] sm:$0xff] %v1292_v45   ;;  %v580_v45 = vadd.f32 %v1795_v42, %v1838_v24 }
 0x21a   :  { %v1424_v16 = vpop.f32.mrf.mxu1 }
 0x21b   :  { %v846_v12 = vadd.f32 %v1424_v16, %v1835_v22 }
 0x21c   :  { %v837_v20 = vpop.f32.mrf.mxu1 }
 0x21d   :  { %v838_v30 = vadd.f32 %v1835_v22, %v837_v20  ;;  %v942_v40 = vadd.f32 %v846_v12, %v546_v32 }
 0x21e   :  { %v1425_v29 = vpop.f32.mrf.mxu1 }
 0x21f   :  { %v849_v34 = vadd.f32 %v1425_v29, %v1835_v22  ;;  %v940_v44 = vadd.f32 %v838_v30, %v536_v9  ;;  %v609_v30 = vpop.f32.mrf.mxu0 }
 0x220   :  { %v840_v37 = vpop.f32.mrf.mxu1  ;;  %v610_v42 = vadd.f32 %v609_v30, %v1838_v24 }
 0x221   :  { %v943_v43 = vadd.f32 %v849_v34, %v550_v36  ;;  %v841_v11 = vadd.f32 %v1835_v22, %v840_v37  ;;  %v606_v37 = vadd.f32 %v1815_v26, %v1838_v24 }
 0x223   :  { %v1307_v59 = vpack.c.bf16 %v943_v43, %v942_v40  ;;  %v941_v46 = vadd.f32 %v841_v11, %v540_v38  ;;  %v596_v43 = vadd.f32 %v1805_v0, %v1838_v24  ;;  %v626_v0 = vadd.f32 %v1792_v39, %v1838_v24 }
 0x225   :  { %1363 = vst [vmem:[#allocation8 + $0x28] sm:$0xff] %v1307_v59   ;;  %v1302_v63 = vpack.c.bf16 %v941_v46, %v940_v44  ;;  %v600_v44 = vadd.f32 %v1811_v7, %v1838_v24  ;;  %v630_v7 = vadd.f32 %v1800_v53, %v1838_v24 }
 0x227   :  { %1362 = vst [vmem:[#allocation8 + $0x20] sm:$0xff] %v1302_v63  }
 0x22a   :  { %v1428_v3 = vpop.f32.mrf.mxu1 }
 0x22b   :  { %v862_v23 = vadd.f32 %v1428_v3, %v1835_v22 }
 0x22c   :  { %v853_v19 = vpop.f32.mrf.mxu1 }
 0x22d   :  { %v854_v27 = vadd.f32 %v1835_v22, %v853_v19  ;;  %v946_v14 = vadd.f32 %v862_v23, %v566_v50 }
 0x22e   :  { %v1429_v48 = vpop.f32.mrf.mxu1 }
 0x22f   :  { %v865_v51 = vadd.f32 %v1429_v48, %v1835_v22  ;;  %v944_v62 = vadd.f32 %v854_v27, %v556_v52 }
 0x230   :  { %v856_v57 = vpop.f32.mrf.mxu1 }
 0x231   :  { %v947_v18 = vadd.f32 %v865_v51, %v570_v54  ;;  %v857_v60 = vadd.f32 %v1835_v22, %v856_v57  ;;  %v616_v57 = vadd.f32 %v1776_v8, %v1838_v24  ;;  %v646_v8 = vadd.f32 %v1825_v55, %v1838_v24 }
 0x233   :  { %v1317_v21 = vpack.c.bf16 %v947_v18, %v946_v14  ;;  %v945_v1 = vadd.f32 %v857_v60, %v560_v58  ;;  %v620_v14 = vadd.f32 %v1784_v25, %v1838_v24  ;;  %v650_v25 = vadd.f32 %v1830_v17, %v1838_v24 }
 0x235   :  { %1365 = vst [vmem:[#allocation8 + $0x38] sm:$0xff] %v1317_v21   ;;  %v1312_v28 = vpack.c.bf16 %v945_v1, %v944_v62 }
 0x237   :  { %1364 = vst [vmem:[#allocation8 + $0x30] sm:$0xff] %v1312_v28  }
 0x23a   :  { %v1432_v2 = vpop.f32.mrf.mxu1 }
 0x23b   :  { %v878_v47 = vadd.f32 %v1432_v2, %v1835_v22 }
 0x23c   :  { %v869_v33 = vpop.f32.mrf.mxu1 }
 0x23d   :  { %v870_v61 = vadd.f32 %v1835_v22, %v869_v33  ;;  %v950_v16 = vadd.f32 %v878_v47, %v586_v5 }
 0x23e   :  { %v1433_v6 = vpop.f32.mrf.mxu1 }
 0x23f   :  { %v881_v10 = vadd.f32 %v1433_v6, %v1835_v22  ;;  %v948_v29 = vadd.f32 %v870_v61, %v576_v41 }
 0x240   :  { %v872_v15 = vpop.f32.mrf.mxu1 }
 0x241   :  { %v951_v20 = vadd.f32 %v881_v10, %v590_v13  ;;  %v873_v12 = vadd.f32 %v1835_v22, %v872_v15  ;;  %v636_v13 = vadd.f32 %v1808_v4, %v1838_v24  ;;  %v640_v10 = vadd.f32 %v1818_v31, %v1838_v24 }
 0x243   :  { %v1327_v49 = vpack.c.bf16 %v951_v20, %v950_v16  ;;  %v949_v32 = vadd.f32 %v873_v12, %v580_v45 }
 0x245   :  { %1367 = vst [vmem:[#allocation8 + $0x48] sm:$0xff] %v1327_v49   ;;  %v1322_v56 = vpack.c.bf16 %v949_v32, %v948_v29 }
 0x247   :  { %1366 = vst [vmem:[#allocation8 + $0x40] sm:$0xff] %v1322_v56  }
 0x24a   :  { %v1436_v36 = vpop.f32.mrf.mxu1 }
 0x24b   :  { %v894_v9 = vadd.f32 %v1436_v36, %v1835_v22 }
 0x24c   :  { %v885_v34 = vpop.f32.mrf.mxu1 }
 0x24d   :  { %v886_v38 = vadd.f32 %v1835_v22, %v885_v34  ;;  %v954_v59 = vadd.f32 %v894_v9, %v606_v37 }
 0x24e   :  { %v1437_v35 = vpop.f32.mrf.mxu1 }
 0x24f   :  { %v897_v40 = vadd.f32 %v1437_v35, %v1835_v22  ;;  %v952_v19 = vadd.f32 %v886_v38, %v596_v43 }
 0x250   :  { %v888_v11 = vpop.f32.mrf.mxu1 }
 0x251   :  { %v955_v46 = vadd.f32 %v897_v40, %v610_v42  ;;  %v889_v63 = vadd.f32 %v1835_v22, %v888_v11 }
 0x252   :  { %v1440_v3 = vpop.f32.mrf.mxu1 }
 0x253   :  { %v1337_v26 = vpack.c.bf16 %v955_v46, %v954_v59  ;;  %v953_v23 = vadd.f32 %v889_v63, %v600_v44  ;;  %v910_v54 = vadd.f32 %v1440_v3, %v1835_v22 }
 0x254   :  { %v901_v48 = vpop.f32.mrf.mxu1 }
 0x255   :  { %1369 = vst [vmem:[#allocation8 + $0x58] sm:$0xff] %v1337_v26   ;;  %v1332_v50 = vpack.c.bf16 %v953_v23, %v952_v19  ;;  %v902_v51 = vadd.f32 %v1835_v22, %v901_v48  ;;  %v958_v18 = vadd.f32 %v910_v54, %v626_v0 }
 0x256   :  { %v1441_v27 = vpop.f32.mrf.mxu1 }
 0x257   :  { %1368 = vst [vmem:[#allocation8 + $0x50] sm:$0xff] %v1332_v50   ;;  %v913_v52 = vadd.f32 %v1441_v27, %v1835_v22  ;;  %v956_v21 = vadd.f32 %v902_v51, %v616_v57 }
 0x258   :  { %v904_v58 = vpop.f32.mrf.mxu1 }
 0x259   :  { %v959_v60 = vadd.f32 %v913_v52, %v630_v7  ;;  %v905_v62 = vadd.f32 %v1835_v22, %v904_v58 }
 0x25a   :  { %v1444_v39 = vpop.f32.mrf.mxu1 }
 0x25b   :  { %v1347_v1 = vpack.c.bf16 %v959_v60, %v958_v18  ;;  %v957_v53 = vadd.f32 %v905_v62, %v620_v14  ;;  %v926_v33 = vadd.f32 %v1444_v39, %v1835_v22 }
 0x25c   :  { %v917_v28 = vpop.f32.mrf.mxu1 }
 0x25d   :  { %1371 = vst [vmem:[#allocation8 + $0x68] sm:$0xff] %v1347_v1   ;;  %v1342_v2 = vpack.c.bf16 %v957_v53, %v956_v21  ;;  %v918_v6 = vadd.f32 %v1835_v22, %v917_v28  ;;  %v962_v41 = vadd.f32 %v926_v33, %v646_v8 }
 0x25e   :  { %v1445_v47 = vpop.f32.mrf.mxu1 }
 0x25f   :  { %1370 = vst [vmem:[#allocation8 + $0x60] sm:$0xff] %v1342_v2   ;;  %v929_v5 = vadd.f32 %v1445_v47, %v1835_v22  ;;  %v960_v55 = vadd.f32 %v918_v6, %v636_v13 }
 0x260   :  { %v920_v61 = vpop.f32.mrf.mxu1 }
 0x261   :  { %v963_v15 = vadd.f32 %v929_v5, %v650_v25  ;;  %v921_v45 = vadd.f32 %v1835_v22, %v920_v61 }
 0x263   :  { %v1357_v17 = vpack.c.bf16 %v963_v15, %v962_v41  ;;  %v961_v16 = vadd.f32 %v921_v45, %v640_v10 }
 0x265   :  { %1373 = vst [vmem:[#allocation8 + $0x78] sm:$0xff] %v1357_v17   ;;  %v1352_v20 = vpack.c.bf16 %v961_v16, %v960_v55 }
 0x267   :  { %1372 = vst [vmem:[#allocation8 + $0x70] sm:$0xff] %v1352_v20  }
 0x268   :  { %1661 = shalt.err (!%p1658_p5)
}
 0x269   :  { %1135 = dma.vmem_to_hbm [thread:$0]  %s1130_s12, 2048, %s1946_s5, [#allocation4], %s1681_s1, %s1681_s1, %s1682_s8  }
 0x26a   :  { %1674 = dma.done.wait [#allocation4], 2048  }
 0x26b   :  { %1675 = vsyncadd [#allocation4], 4294965248 }
 0x26c   :  { %1139 = vsyncpa [#allocation3], 1 }
 0x26d   :  { %1140 = vsyncpa [#allocation6], 1 }
 0x26e   :  { %1141 = vsyncpa [#allocation4], 1 }

</bundles_post_ra>
